<compile_context>
chip_gen: v7x
topology: tpu7x:2x2x1
jax: 0.10.0
libtpu: 0.0.40
codegen_flags: <defaults>
</compile_context>

<pallas_src>
import numpy as np
import jax
import jax.numpy as jnp
from jax.experimental import pallas as pl
from jax.experimental.pallas import tpu as pltpu


_LANES = 128
_MASK_ROW_TILE = 2048      # rows per grid step on the tiled mask path (1 MiB f32 in)
_ARGMAX_N_TILE = 8 * 1024  # lane-axis tile for the tiled argmax path


def _round_up(x, m):
    return (x + m - 1) // m * m


# ----------------------------------------------------------------------------
# Pallas kernels
# ----------------------------------------------------------------------------
def _argmax_sublane_kernel(x_ref, idx_ref):
    """argmax over the class axis (sublanes), first-max-wins on ties.

    x_ref:   (B, C, TN)  classes on sublanes, shaking index on lanes
    idx_ref: (B, TN)     int32 argmax index (lane-dense output)
    """
    x = x_ref[...]                     # keep native dtype; no forced f32 cast
    c = x.shape[1]
    m = jnp.max(x, axis=1, keepdims=True)                     # (B, 1, TN)
    iota = jax.lax.broadcasted_iota(jnp.int32, x.shape, 1)    # class ids
    cand = jnp.where(x == m, iota, c)                         # first max wins
    # TODO(synk): NaN logits yield index C here vs "first NaN" in np.argmax.
    idx_ref[...] = jnp.min(cand, axis=1).astype(jnp.int32)


def _pos_mask_kernel(x_ref, o_ref):
    """elementwise (x > 0) mask on a lane-dense [rows, 128] slab, int8 out."""
    o_ref[...] = (x_ref[...] > 0).astype(jnp.int8)


# ----------------------------------------------------------------------------
# Kernel wrappers (layout plumbing + pallas_call)
# ----------------------------------------------------------------------------
def argmax_last(x):
    """x: [B, N, C] float -> [B, >=N] int32 argmax over C (first-max-wins).

    Class axis is moved to sublanes, N is padded to a multiple of 128 lanes.
    Padded columns are all-zero -> argmax 0 -> ignored by the host ">0" test.
    """
    b, n, c = x.shape
    xt = jnp.transpose(x, (0, 2, 1))                     # [B, C, N]
    n_pad = _round_up(n, _LANES)
    if n_pad != n:
        xt = jnp.pad(xt, ((0, 0), (0, 0), (0, n_pad - n)))

    if n_pad <= _ARGMAX_N_TILE:
        # tiny case: whole array resident in VMEM, no grid bookkeeping
        return pl.pallas_call(
            _argmax_sublane_kernel,
            out_shape=jax.ShapeDtypeStruct((b, n_pad), jnp.int32),
            in_specs=[pl.BlockSpec(memory_space=pltpu.MemorySpace.VMEM)],
            out_specs=pl.BlockSpec(memory_space=pltpu.MemorySpace.VMEM),
        )(xt)

    # production path: tile the lane axis, shard across TensorCores
    n_t = _round_up(n_pad, _ARGMAX_N_TILE)
    if n_t != n_pad:
        xt = jnp.pad(xt, ((0, 0), (0, 0), (0, n_t - n_pad)))
    return pl.pallas_call(
        _argmax_sublane_kernel,
        out_shape=jax.ShapeDtypeStruct((b, n_t), jnp.int32),
        grid=(n_t // _ARGMAX_N_TILE,),
        in_specs=[pl.BlockSpec((b, c, _ARGMAX_N_TILE), lambda i: (0, 0, i))],
        out_specs=pl.BlockSpec((b, _ARGMAX_N_TILE), lambda i: (0, i)),
        compiler_params=pltpu.CompilerParams(
            dimension_semantics=("parallel",),
            vmem_limit_bytes=32 * 1024 * 1024),
    )(xt)


def positive_mask(x):
    """x: any shape -> int8 (x > 0) mask, flattened & zero-padded to [rows, 128].

    Host side recovers original (row-major) positions with np.unravel_index.
    """
    total = int(np.prod(x.shape))
    flat = x.reshape(-1)
    padded = _round_up(total, 8 * _LANES)        # fill (8, 128) f32 tiles
    if padded != total:
        flat = jnp.pad(flat, (0, padded - total))
    rows = padded // _LANES
    x2d = flat.reshape(rows, _LANES)

    if rows <= _MASK_ROW_TILE:
        # tiny case: whole array resident in VMEM, no grid bookkeeping
        return pl.pallas_call(
            _pos_mask_kernel,
            out_shape=jax.ShapeDtypeStruct((rows, _LANES), jnp.int8),
            in_specs=[pl.BlockSpec(memory_space=pltpu.MemorySpace.VMEM)],
            out_specs=pl.BlockSpec(memory_space=pltpu.MemorySpace.VMEM),
        )(x2d)

    # production path: row-tiled, megacore-parallel, Pallas double-buffers
    rows_t = _round_up(rows, _MASK_ROW_TILE)
    if rows_t != rows:
        x2d = jnp.pad(x2d, ((0, rows_t - rows), (0, 0)))
    return pl.pallas_call(
        _pos_mask_kernel,
        out_shape=jax.ShapeDtypeStruct((rows_t, _LANES), jnp.int8),
        grid=(rows_t // _MASK_ROW_TILE,),
        in_specs=[pl.BlockSpec((_MASK_ROW_TILE, _LANES), lambda i: (i, 0))],
        out_specs=pl.BlockSpec((_MASK_ROW_TILE, _LANES), lambda i: (i, 0)),
        compiler_params=pltpu.CompilerParams(
            dimension_semantics=("parallel",),
            vmem_limit_bytes=32 * 1024 * 1024),
    )(x2d)


# ----------------------------------------------------------------------------
# RiconPostProcess forward (glue around the kernels)
# ----------------------------------------------------------------------------
def build_shaking_idx2matrix_idx(matrix_size, ngram):
    pairs = []
    for a1 in range(matrix_size):
        for b1 in range(matrix_size):
            if b1 >= a1:
                if b1 - a1 + 1 > ngram:
                    continue
                pairs.append((a1, b1))
    return pairs


def ricon_postprocess(logits, labels=None, attention_mask=None, *,
                      ngram, multilabel_loss):
    matrix_size = attention_mask.shape[1]
    shaking_idx2matrix_idx = build_shaking_idx2matrix_idx(matrix_size, ngram)

    b, n, c = logits.shape
    results = [[] for _ in range(b)]

    # 1) dispatch exactly one Pallas kernel (async)
    if multilabel_loss:
        dev_out = positive_mask(logits)          # int8 [rows, 128]
    else:
        dev_out = argmax_last(logits)            # int32 [B, N_pad]

    # 2) single device->host transfer wave for everything the host loops need
    #    (labels are shipped raw: their values are required on host anyway,
    #     so an extra mask kernel would only add bytes + a launch).
    if labels is not None:
        out_np, labels_np = jax.device_get((dev_out, labels))
    else:
        out_np = jax.device_get(dev_out)
        labels_np = None

    # 3) host-side sparse bookkeeping (the `defaultlist` logic of the module)
    # TODO(synk): device-side compaction of (b, idx, c) hits (ship O(hits)
    # instead of the dense mask) needs a sort/scan pipeline; left host-side.
    if multilabel_loss:
        total = b * n * c
        flat_hits = np.flatnonzero(out_np.reshape(-1)[:total])
        bs, idxs, cs = np.unravel_index(flat_hits, (b, n, c))
        for bb, idx, cc in zip(bs, idxs, cs):
            if cc == 0:
                continue
            start, end = shaking_idx2matrix_idx[idx]
            results[int(bb)].append((int(cc), int(start), int(end)))
    else:
        pred_np = out_np[:, :n]                  # drop lane padding
        for bb, idx in zip(*np.where(pred_np > 0)):
            start, end = shaking_idx2matrix_idx[idx]
            results[int(bb)].append((int(pred_np[bb, idx]), int(start), int(end)))

    if labels is not None:
        new_labels = [[] for _ in range(labels_np.shape[0])]
        for bb, start, end in zip(*np.where(labels_np > 0)):
            new_labels[int(bb)].append((int(labels_np[bb, start, end]),
                                        int(start), int(end)))
        return results, new_labels
    return results


# ----------------------------------------------------------------------------
# Pure-numpy reference (mirrors the PyTorch module exactly)
# ----------------------------------------------------------------------------
def ricon_postprocess_ref(logits_np, labels_np, attention_mask_np, *,
                          ngram, multilabel_loss):
    matrix_size = attention_mask_np.shape[1]
    shaking_idx2matrix_idx = build_shaking_idx2matrix_idx(matrix_size, ngram)

    batch = logits_np.shape[0]
    results = [[] for _ in range(batch)]
    if multilabel_loss:
        for b, idx, c in zip(*np.where(logits_np > 0)):
            if c == 0:
                continue
            start, end = shaking_idx2matrix_idx[idx]
            results[b].append((int(c), int(start), int(end)))
    else:
        pred = logits_np.argmax(-1)
        for b, idx in zip(*np.where(pred > 0)):
            start, end = shaking_idx2matrix_idx[idx]
            results[b].append((int(pred[b, idx]), int(start), int(end)))

    new_labels = [[] for _ in range(labels_np.shape[0])]
    for b, start, end in zip(*np.where(labels_np > 0)):
        new_labels[b].append((int(labels_np[b, start, end]),
                              int(start), int(end)))
    return results, new_labels


# ----------------------------------------------------------------------------
# Main
# ----------------------------------------------------------------------------
if __name__ == "__main__":
    B, S, C = 2, 16, 8          # batch, sequence length (matrix_size), classes
    NGRAM = 3

    # Number of shaking indices implied by (S, ngram)
    N = len(build_shaking_idx2matrix_idx(S, NGRAM))  # = 45 for S=16, ngram=3

    key = jax.random.PRNGKey(0)
    k_logits, k_labels = jax.random.split(key)

    logits = jax.random.normal(k_logits, (B, N, C), dtype=jnp.float32)
    # sparse integer labels in [0, C): mostly zeros
    raw = jax.random.randint(k_labels, (B, S, S), 0, 4 * C, dtype=jnp.int32)
    labels = jnp.where(raw < C, raw, 0).astype(jnp.int32)
    attention_mask = jnp.ones((B, S), dtype=jnp.int32)

    # smoke: run each kernel once and block on the result
    jax.block_until_ready(argmax_last(logits))
    jax.block_until_ready(positive_mask(logits))

    # --- single-label path (multilabel_loss=False) ---
    res, new_lab = ricon_postprocess(
        logits, labels, attention_mask, ngram=NGRAM, multilabel_loss=False)
    res_ref, new_lab_ref = ricon_postprocess_ref(
        np.asarray(logits), np.asarray(labels), np.asarray(attention_mask),
        ngram=NGRAM, multilabel_loss=False)
    assert res == res_ref, (res, res_ref)
    assert new_lab == new_lab_ref, (new_lab, new_lab_ref)

    # --- multilabel path (multilabel_loss=True) ---
    res_m, new_lab_m = ricon_postprocess(
        logits, labels, attention_mask, ngram=NGRAM, multilabel_loss=True)
    res_m_ref, new_lab_m_ref = ricon_postprocess_ref(
        np.asarray(logits), np.asarray(labels), np.asarray(attention_mask),
        ngram=NGRAM, multilabel_loss=True)
    assert res_m == res_m_ref, (res_m, res_m_ref)
    assert new_lab_m == new_lab_m_ref, (new_lab_m, new_lab_m_ref)

    # --- no-labels call path (module returns only `results`) ---
    res_nl = ricon_postprocess(
        logits, None, attention_mask, ngram=NGRAM, multilabel_loss=False)
    assert res_nl == res_ref, (res_nl, res_ref)

    print("KERNEL_OK")
</pallas_src>

<mosaic_0001>
module attributes {stable_mosaic.version = 11 : i64} {
  func.func @_argmax_sublane_kernel(%arg0: memref<2x8x128xf32, #tpu.memory_space<vmem>>, %arg1: memref<2x128xi32, #tpu.memory_space<vmem>>) attributes {dimension_semantics = [], scalar_prefetch = 0 : i64, scratch_operands = 0 : i64, tpu.core_type = #tpu.core_type<tc>} {
    %c0 = arith.constant 0 : index
    %c0_0 = arith.constant 0 : index
    %c0_1 = arith.constant 0 : index
    %0 = vector.load %arg0[%c0, %c0_0, %c0_1] : memref<2x8x128xf32, #tpu.memory_space<vmem>>, vector<2x8x128xf32>
    %cst = arith.constant dense<0xFF800000> : vector<2x128xf32>
    %1 = vector.multi_reduction <maximumf>, %0, %cst [1] : vector<2x8x128xf32> to vector<2x128xf32>
    %2 = vector.shape_cast %1 : vector<2x128xf32> to vector<2x1x128xf32>
    %3 = tpu.iota {dimensions = array<i32: 1>} : vector<2x8x128xi32>
    %4 = vector.broadcast %2 : vector<2x1x128xf32> to vector<2x8x128xf32>
    %5 = arith.cmpf oeq, %0, %4 : vector<2x8x128xf32>
    %c8_i32 = arith.constant 8 : i32
    %6 = vector.broadcast %c8_i32 : i32 to vector<2x8x128xi32>
    %7 = arith.select %5, %3, %6 : vector<2x8x128xi1>, vector<2x8x128xi32>
    %cst_2 = arith.constant dense<2147483647> : vector<2x128xi32>
    %8 = vector.multi_reduction <minsi>, %7, %cst_2 [1] : vector<2x8x128xi32> to vector<2x128xi32>
    %c0_3 = arith.constant 0 : index
    %c0_4 = arith.constant 0 : index
    %9 = vector.load %arg1[%c0_3, %c0_4] : memref<2x128xi32, #tpu.memory_space<vmem>>, vector<2x128xi32>
    tpu.vector_store %arg1[%c0_3, %c0_4], %8 {strides = array<i32>} : memref<2x128xi32, #tpu.memory_space<vmem>>, vector<2x128xi32>,
    return
  }
}

</mosaic_0001>

<bundles_post_ra>
// kernel: tpu_custom_call.1
= control target key start
LH: loop header
LB: loop body
LE: loop exit
PB: predicated region body
PF: predicated region fallthrough
CT: control target
= control target key end

     0   :  { %6 = vsyncpa [#allocation3], 0  ;;  %s169_s0 = inlined_call_operand.hbm [shape: f32[2,8,128], index: 0, kind: input, shape index: {}]   ;;  %s170_s1 = inlined_call_operand.hbm [shape: s32[2,128], index: 1, kind: output, shape index: {}]  }
   0x1   :  { %7 = vsyncpa [#allocation4], 0  ;;  %s131_s6 = smov [#allocation2]   ;;  %s83_s10 = scalar_lea.hbm %s169_s0, 256 }
   0x2   :  { %s13_s7 = sshll.u32 %s131_s6, 4  ;;  %p84_p0 = scmp.ne.s32.totalorder %s169_s0, %s83_s10  ;;  %s14_s7 = int_to_ptr.vmem [resolvable:$true] %s13_s7 }
   0x3   :  { %p87_p1 = scmp.lt.u32.totalorder %s83_s10, %s169_s0 }
   0x5   :  { %p89_p2 = pnand %p87_p1, %p84_p0 }
   0x7   :  { %92 = shalt.err (!%p89_p2)
}
   0x8   :  { %s93_s15 = scalar_lea.vmem %s14_s7, 256  ;;  %p98_p4 = scmp.lt.s32.totalorder %s14_s7, %s14_s7 }
   0x9   :  { %p94_p3 = scmp.ne.s32.totalorder %s14_s7, %s93_s15  ;;  %p99_p5 = scmp.lt.s32.totalorder %s93_s15, %s93_s15 }
   0xb   :  { %p100_p6 = por %p99_p5, %p98_p4 }
   0xd   :  { %p101_p7 = pnand %p100_p6, %p94_p3 }
   0xf   :  { %104 = shalt.err (!%p101_p7)
}
  0x10   :  { %s132_s16 = smov 128   ;;  %s133_s17 = smov 8  }
  0x11   :  { %19 = dma.hbm_to_vmem [thread:$0]  %s169_s0, 256, %s14_s7, [#allocation3], %s132_s16, %s132_s16, %s133_s17  }
  0x12   :  { %127 = dma.done.wait [#allocation3], 256  }
  0x13   :  { %128 = vsyncadd [#allocation3], 4294967040  ;;  %v23_v0 = vld [vmem:[#allocation2] sm:$0xff]  ;;  %v24_v1 = vld [vmem:[#allocation2 + $0x8] sm:$0xff]  ;;  %v37_v8 = vlaneseq  ;;  %s134_s0 = smov [#allocation5]   ;;  %vm61_vm6 = vcmask 1041409  }
  0x14   :  { %v25_v2 = vrot.slane %v23_v0, 4  ;;  %v31_v3 = vrot.slane %v24_v1, 4  ;;  %s70_s20 = sshll.u32 %s134_s0, 4  ;;  %s71_s20 = int_to_ptr.vmem [resolvable:$true] %s70_s20 }
  0x15   :  { %v38_v13 = vshrl.u32 %v37_v8, 7  ;;  %s105_s21 = scalar_lea.vmem %s71_s20, 32  ;;  %p110_p9 = scmp.lt.s32.totalorder %s71_s20, %s71_s20 }
  0x16   :  { %v26_v4 = vmax.f32 %v23_v0, %v25_v2  ;;  %v32_v5 = vmax.f32 %v24_v1, %v31_v3  ;;  %p106_p8 = scmp.ne.s32.totalorder %s71_s20, %s105_s21  ;;  %p111_p10 = scmp.lt.s32.totalorder %s105_s21, %s105_s21 }
  0x18   :  { %v27_v6 = vrot.slane %v26_v4, 2  ;;  %v33_v7 = vrot.slane %v32_v5, 2  ;;  %p112_p11 = por %p111_p10, %p110_p9 }
  0x1a   :  { %v28_v9 = vmax.f32 %v26_v4, %v27_v6  ;;  %v34_v10 = vmax.f32 %v32_v5, %v33_v7  ;;  %p113_p12 = pnand %p112_p11, %p106_p8 }
  0x1c   :  { %v29_v11 = vrot.slane %v28_v9, 1  ;;  %v35_v12 = vrot.slane %v34_v10, 1 }
  0x1e   :  { %v30_v14 = vmax.f32 %v28_v9, %v29_v11  ;;  %v36_v15 = vmax.f32 %v34_v10, %v35_v12 }
  0x20   :  { %vm39_vm0 = vcmp.eq.f32.partialorder %v23_v0, %v30_v14  ;;  %vm40_vm1 = vcmp.eq.f32.partialorder %v24_v1, %v36_v15 }
  0x21   :  { %v41_v16 = vsel %vm39_vm0, %v38_v13, 8  ;;  %v42_v17 = vsel %vm40_vm1, %v38_v13, 8 }
  0x22   :  { %v43_v18 = vrot.slane %v41_v16, 4  ;;  %v52_v19 = vrot.slane %v42_v17, 4 }
  0x24   :  { %vm44_vm2 = vcmp.lt.s32.totalorder %v41_v16, %v43_v18  ;;  %vm53_vm3 = vcmp.lt.s32.totalorder %v42_v17, %v52_v19 }
  0x25   :  { %v45_v20 = vsel %vm44_vm2, %v41_v16, %v43_v18  ;;  %v54_v21 = vsel %vm53_vm3, %v42_v17, %v52_v19 }
  0x26   :  { %v46_v22 = vrot.slane %v45_v20, 2  ;;  %v55_v23 = vrot.slane %v54_v21, 2 }
  0x28   :  { %vm47_vm4 = vcmp.lt.s32.totalorder %v45_v20, %v46_v22  ;;  %vm56_vm5 = vcmp.lt.s32.totalorder %v54_v21, %v55_v23 }
  0x29   :  { %v48_v24 = vsel %vm47_vm4, %v45_v20, %v46_v22  ;;  %v57_v25 = vsel %vm56_vm5, %v54_v21, %v55_v23 }
  0x2a   :  { %v49_v26 = vrot.slane %v48_v24, 1  ;;  %v58_v27 = vrot.slane %v57_v25, 1 }
  0x2c   :  { %vm50_vm7 = vcmp.lt.s32.totalorder %v48_v24, %v49_v26  ;;  %vm59_vm8 = vcmp.lt.s32.totalorder %v57_v25, %v58_v27 }
  0x2d   :  { %v51_v28 = vsel %vm50_vm7, %v48_v24, %v49_v26  ;;  %v60_v29 = vsel %vm59_vm8, %v57_v25, %v58_v27 }
  0x2e   :  { %v62_v30 = vsel %vm61_vm6, %v60_v29, %v51_v28 }
  0x2f   :  { %63 = vst [vmem:[#allocation5] sm:$0x3] %v62_v30 }
  0x30   :  { %116 = shalt.err (!%p113_p12)
}
  0x31   :  { %s117_s24 = scalar_lea.hbm %s170_s1, 32 }
  0x32   :  { %p118_p13 = scmp.ne.s32.totalorder %s170_s1, %s117_s24  ;;  %p121_p0 = scmp.lt.u32.totalorder %s117_s24, %s170_s1 }
  0x34   :  { %p123_p1 = pnand %p121_p0, %p118_p13 }
  0x36   :  { %126 = shalt.err (!%p123_p1)
}
  0x37   :  { %73 = dma.vmem_to_hbm [thread:$0]  %s71_s20, 32, %s170_s1, [#allocation4]  }
  0x38   :  { %129 = dma.done.wait [#allocation4], 32  }
  0x39   :  { %130 = vsyncadd [#allocation4], 4294967264 }
  0x3a   :  { %77 = vsyncpa [#allocation3], 1 }
  0x3b   :  { %78 = vsyncpa [#allocation4], 1 }

</bundles_post_ra>
